<compile_context>
chip_gen: v7x
topology: tpu7x:2x2x1
jax: 0.10.0
libtpu: 0.0.40
codegen_flags: <defaults>
</compile_context>

<pallas_src>
import functools

import jax
import jax.numpy as jnp
from jax import lax
from jax.experimental import pallas as pl
from jax.experimental.pallas import tpu as pltpu


# Dimension numbers for "A @ B.T" (contract last dim of both operands) so the
# MXU consumes the transposed RHS directly, with no materialized transpose.
_TRANS_B = (((1,), (1,)), ((), ()))


# ----------------------------------------------------------------------------
# Fused kernel: one block of `batch_per_block` batch elements per grid step.
# ----------------------------------------------------------------------------
def _fused_attention_kernel(x_ref, wqkv_ref, wproj_ref, bproj_ref, o_ref,
                            ctx_ref, *, num_heads, scale, batch_per_block,
                            seq_len):
    N = seq_len
    Bb = batch_per_block
    C = x_ref.shape[1]
    d = C // num_heads

    # QKV for every row of this batch block in ONE plain-contraction matmul
    # (weights pre-transposed to (C, 3C) in the wrapper -> no in-kernel vxpose).
    qkv = jnp.dot(x_ref[...], wqkv_ref[...],
                  preferred_element_type=jnp.float32)            # (Bb*N, 3C)

    # Per-(batch, head) scaled-dot-product attention; static Python loops,
    # static row/lane slices of the in-VMEM qkv value.  Head outputs go
    # straight into the ctx scratch (no list + concat).
    for b in range(Bb):
        r0 = b * N
        for h in range(num_heads):
            # Fold the 1/sqrt(d) scale into q (N*d mults instead of N*N).
            qh = qkv[r0:r0 + N, 0 * C + h * d:0 * C + (h + 1) * d] * scale
            kh = qkv[r0:r0 + N, 1 * C + h * d:1 * C + (h + 1) * d]
            vh = qkv[r0:r0 + N, 2 * C + h * d:2 * C + (h + 1) * d]

            # s = (q*scale) @ k^T via transposed-RHS contraction.
            s = lax.dot_general(qh, kh, dimension_numbers=_TRANS_B,
                                preferred_element_type=jnp.float32)  # (N, N)
            s = s - jnp.max(s, axis=-1, keepdims=True)               # stable
            p = jnp.exp(s)
            denom = jnp.sum(p, axis=-1, keepdims=True)
            # EUP approx reciprocal + one Newton-Raphson step (~f32-exact).
            inv = pl.reciprocal(denom, approx=True)
            inv = inv * (2.0 - denom * inv)
            p = p * inv
            # attn_drop is p=0.0 -> identity (no-op).

            ctx_ref[r0:r0 + N, h * d:(h + 1) * d] = jnp.dot(
                p, vh, preferred_element_type=jnp.float32)

    # Output projection over the whole batch block: ctx @ W_proj^T + b_proj
    # (W_proj pre-transposed in the wrapper -> plain contraction).
    y = jnp.dot(ctx_ref[...], wproj_ref[...],
                preferred_element_type=jnp.float32)              # (Bb*N, C)
    y = y + bproj_ref[...]                                       # + (1, C)
    # proj_drop is p=0.0 -> identity (no-op).
    o_ref[...] = y.astype(o_ref.dtype)


# ----------------------------------------------------------------------------
# Wrapper
# ----------------------------------------------------------------------------
def attention_forward(x, w_qkv, w_proj, b_proj, num_heads, batch_blocks=None):
    """x: (B, N, C); w_qkv: (3C, C); w_proj: (C, C); b_proj: (C,)."""
    B, N, C = x.shape
    d = C // num_heads
    scale = d ** (-0.5)

    if batch_blocks is None:
        # Only v7x has 2 TensorCores/chip; elsewhere extra grid steps are
        # pure per-step overhead, so collapse the batch into one step.
        try:
            kind = jax.devices()[0].device_kind.lower()
        except Exception:  # pragma: no cover - defensive
            kind = ""
        batch_blocks = 2 if ("v7" in kind and B >= 2 and B % 2 == 0) else 1
    assert B % batch_blocks == 0
    Bb = B // batch_blocks

    # One-time wrapper-side layout prep (outside the hot loop):
    #   * flatten batch so QKV / proj run as single (B*N, C) matmuls,
    #   * transpose weights so in-kernel contractions are plain (no vxpose).
    x2 = x.reshape(B * N, C)
    wqkv_t = jnp.transpose(w_qkv)       # (C, 3C)
    wproj_t = jnp.transpose(w_proj)     # (C, C)
    bproj2 = b_proj.reshape(1, C)

    kernel = functools.partial(_fused_attention_kernel,
                               num_heads=num_heads, scale=scale,
                               batch_per_block=Bb, seq_len=N)

    out = pl.pallas_call(
        kernel,
        out_shape=jax.ShapeDtypeStruct((B * N, C), x.dtype),
        grid=(batch_blocks,),
        in_specs=[
            pl.BlockSpec((Bb * N, C), lambda i: (i, 0)),     # x rows per block
            pl.BlockSpec((C, 3 * C), lambda i: (0, 0)),      # W_qkv^T (resident)
            pl.BlockSpec((C, C), lambda i: (0, 0)),          # W_proj^T (resident)
            pl.BlockSpec((1, C), lambda i: (0, 0)),          # b_proj (resident)
        ],
        out_specs=pl.BlockSpec((Bb * N, C), lambda i: (i, 0)),
        scratch_shapes=[pltpu.VMEM((Bb * N, C), jnp.float32)],  # ctx buffer
        compiler_params=pltpu.CompilerParams(
            dimension_semantics=("parallel",)),
    )(x2, wqkv_t, wproj_t, bproj2)

    return out.reshape(B, N, C)


# ----------------------------------------------------------------------------
# Pure-JAX reference (mirrors the PyTorch forward exactly)
# ----------------------------------------------------------------------------
def attention_ref(x, w_qkv, w_proj, b_proj, num_heads):
    B, N, C = x.shape
    d = C // num_heads
    scale = d ** (-0.5)
    qkv = (x @ w_qkv.T).reshape(B, N, 3, num_heads, d).transpose(2, 0, 3, 1, 4)
    q, k, v = qkv[0], qkv[1], qkv[2]
    attn = jnp.einsum("bhnd,bhmd->bhnm", q, k) * scale
    attn = jax.nn.softmax(attn, axis=-1)
    out = jnp.einsum("bhnm,bhmd->bhnd", attn, v)
    out = out.transpose(0, 2, 1, 3).reshape(B, N, C)
    return out @ w_proj.T + b_proj


# ----------------------------------------------------------------------------
# Main
# ----------------------------------------------------------------------------
if __name__ == "__main__":
    B, N, C, H = 2, 8, 32, 4   # dim=32, num_heads=4 -> head_dim=8

    key = jax.random.PRNGKey(0)
    kx, kqkv, kproj, kb = jax.random.split(key, 4)

    x = jax.random.normal(kx, (B, N, C), dtype=jnp.float32)
    # qkv_bias=False in the module -> no qkv bias.
    w_qkv = 0.05 * jax.random.normal(kqkv, (3 * C, C), dtype=jnp.float32)
    w_proj = 0.05 * jax.random.normal(kproj, (C, C), dtype=jnp.float32)
    b_proj = 0.05 * jax.random.normal(kb, (C,), dtype=jnp.float32)

    out = attention_forward(x, w_qkv, w_proj, b_proj, H)
    out = jax.block_until_ready(out)

    ref = attention_ref(x, w_qkv, w_proj, b_proj, H)
    assert out.shape == (B, N, C)
    assert jnp.allclose(out, ref, atol=1e-5, rtol=1e-5), "mismatch vs reference"

    print("KERNEL_OK")
</pallas_src>

<mosaic_0001>
module attributes {stable_mosaic.version = 11 : i64} {
  func.func @_fused_attention_kernel(%arg0: i32, %arg1: memref<16x32xf32, #tpu.memory_space<vmem>>, %arg2: memref<32x96xf32, #tpu.memory_space<vmem>>, %arg3: memref<32x32xf32, #tpu.memory_space<vmem>>, %arg4: memref<1x32xf32, #tpu.memory_space<vmem>>, %arg5: memref<16x32xf32, #tpu.memory_space<vmem>>, %arg6: memref<16x32xf32, #tpu.memory_space<vmem>>) attributes {dimension_semantics = [#tpu.dimension_semantics<parallel>], iteration_bounds = array<i64: 1>, scalar_prefetch = 0 : i64, scratch_operands = 1 : i64, tpu.core_type = #tpu.core_type<tc>, window_params = [{transform_indices = @transform_0, window_bounds = array<i64: 16, 32>}, {pipeline_mode = #tpu.pipeline_mode<synchronous>, transform_indices = @transform_1, window_bounds = array<i64: 32, 96>}, {pipeline_mode = #tpu.pipeline_mode<synchronous>, transform_indices = @transform_2, window_bounds = array<i64: 32, 32>}, {pipeline_mode = #tpu.pipeline_mode<synchronous>, transform_indices = @transform_3, window_bounds = array<i64: 1, 32>}, {transform_indices = @transform_4, window_bounds = array<i64: 16, 32>}]} {
    %c0 = arith.constant 0 : index
    %c0_0 = arith.constant 0 : index
    %0 = vector.load %arg1[%c0, %c0_0] : memref<16x32xf32, #tpu.memory_space<vmem>>, vector<16x32xf32>
    %c0_1 = arith.constant 0 : index
    %c0_2 = arith.constant 0 : index
    %1 = vector.load %arg2[%c0_1, %c0_2] : memref<32x96xf32, #tpu.memory_space<vmem>>, vector<32x96xf32>
    %cst = arith.constant dense<0.000000e+00> : vector<16x96xf32>
    %2 = tpu.matmul %0, %1, %cst {dimension_numbers = #tpu.dot_dimension_numbers<[1], [0], [0], [1], [0, 0, 1, 1], [], []>} : vector<16x32xf32>, vector<32x96xf32>, vector<16x96xf32> -> vector<16x96xf32>
    %3 = vector.extract_strided_slice %2 {offsets = [0, 0], sizes = [8, 8], strides = [1, 1]} : vector<16x96xf32> to vector<8x8xf32>
    %cst_3 = arith.constant 0.353553385 : f32
    %4 = vector.broadcast %cst_3 : f32 to vector<8x8xf32>
    %5 = arith.mulf %3, %4 : vector<8x8xf32>
    %6 = vector.extract_strided_slice %2 {offsets = [0, 32], sizes = [8, 8], strides = [1, 1]} : vector<16x96xf32> to vector<8x8xf32>
    %7 = vector.extract_strided_slice %2 {offsets = [0, 64], sizes = [8, 8], strides = [1, 1]} : vector<16x96xf32> to vector<8x8xf32>
    %cst_4 = arith.constant dense<0.000000e+00> : vector<8x8xf32>
    %8 = tpu.matmul %5, %6, %cst_4 {dimension_numbers = #tpu.dot_dimension_numbers<[1], [1], [0], [0], [0, 0, 1, 0], [], []>} : vector<8x8xf32>, vector<8x8xf32>, vector<8x8xf32> -> vector<8x8xf32>
    %cst_5 = arith.constant dense<0xFF800000> : vector<8xf32>
    %9 = vector.multi_reduction <maximumf>, %8, %cst_5 [1] : vector<8x8xf32> to vector<8xf32>
    %10 = vector.shape_cast %9 : vector<8xf32> to vector<8x1xf32>
    %11 = vector.broadcast %10 : vector<8x1xf32> to vector<8x8xf32>
    %12 = arith.subf %8, %11 : vector<8x8xf32>
    %13 = math.exp %12 : vector<8x8xf32>
    %cst_6 = arith.constant dense<0.000000e+00> : vector<8xf32>
    %14 = vector.multi_reduction <add>, %13, %cst_6 [1] : vector<8x8xf32> to vector<8xf32>
    %15 = vector.shape_cast %14 : vector<8xf32> to vector<8x1xf32>
    %16 = tpu.reciprocal %15 {approx = true} : vector<8x1xf32> -> vector<8x1xf32>
    %17 = arith.mulf %15, %16 : vector<8x1xf32>
    %cst_7 = arith.constant 2.000000e+00 : f32
    %18 = vector.broadcast %cst_7 : f32 to vector<8x1xf32>
    %19 = arith.subf %18, %17 : vector<8x1xf32>
    %20 = arith.mulf %16, %19 : vector<8x1xf32>
    %21 = vector.broadcast %20 : vector<8x1xf32> to vector<8x8xf32>
    %22 = arith.mulf %13, %21 : vector<8x8xf32>
    %cst_8 = arith.constant dense<0.000000e+00> : vector<8x8xf32>
    %23 = tpu.matmul %22, %7, %cst_8 {dimension_numbers = #tpu.dot_dimension_numbers<[1], [0], [0], [1], [0, 0, 1, 1], [], []>} : vector<8x8xf32>, vector<8x8xf32>, vector<8x8xf32> -> vector<8x8xf32>
    %c0_9 = arith.constant 0 : index
    %c0_10 = arith.constant 0 : index
    %24 = vector.load %arg6[%c0_9, %c0_10] : memref<16x32xf32, #tpu.memory_space<vmem>>, vector<8x8xf32>
    tpu.vector_store %arg6[%c0_9, %c0_10], %23 {strides = array<i32>} : memref<16x32xf32, #tpu.memory_space<vmem>>, vector<8x8xf32>,
    %25 = vector.extract_strided_slice %2 {offsets = [0, 8], sizes = [8, 8], strides = [1, 1]} : vector<16x96xf32> to vector<8x8xf32>
    %cst_11 = arith.constant 0.353553385 : f32
    %26 = vector.broadcast %cst_11 : f32 to vector<8x8xf32>
    %27 = arith.mulf %25, %26 : vector<8x8xf32>
    %28 = vector.extract_strided_slice %2 {offsets = [0, 40], sizes = [8, 8], strides = [1, 1]} : vector<16x96xf32> to vector<8x8xf32>
    %29 = vector.extract_strided_slice %2 {offsets = [0, 72], sizes = [8, 8], strides = [1, 1]} : vector<16x96xf32> to vector<8x8xf32>
    %cst_12 = arith.constant dense<0.000000e+00> : vector<8x8xf32>
    %30 = tpu.matmul %27, %28, %cst_12 {dimension_numbers = #tpu.dot_dimension_numbers<[1], [1], [0], [0], [0, 0, 1, 0], [], []>} : vector<8x8xf32>, vector<8x8xf32>, vector<8x8xf32> -> vector<8x8xf32>
    %cst_13 = arith.constant dense<0xFF800000> : vector<8xf32>
    %31 = vector.multi_reduction <maximumf>, %30, %cst_13 [1] : vector<8x8xf32> to vector<8xf32>
    %32 = vector.shape_cast %31 : vector<8xf32> to vector<8x1xf32>
    %33 = vector.broadcast %32 : vector<8x1xf32> to vector<8x8xf32>
    %34 = arith.subf %30, %33 : vector<8x8xf32>
    %35 = math.exp %34 : vector<8x8xf32>
    %cst_14 = arith.constant dense<0.000000e+00> : vector<8xf32>
    %36 = vector.multi_reduction <add>, %35, %cst_14 [1] : vector<8x8xf32> to vector<8xf32>
    %37 = vector.shape_cast %36 : vector<8xf32> to vector<8x1xf32>
    %38 = tpu.reciprocal %37 {approx = true} : vector<8x1xf32> -> vector<8x1xf32>
    %39 = arith.mulf %37, %38 : vector<8x1xf32>
    %cst_15 = arith.constant 2.000000e+00 : f32
    %40 = vector.broadcast %cst_15 : f32 to vector<8x1xf32>
    %41 = arith.subf %40, %39 : vector<8x1xf32>
    %42 = arith.mulf %38, %41 : vector<8x1xf32>
    %43 = vector.broadcast %42 : vector<8x1xf32> to vector<8x8xf32>
    %44 = arith.mulf %35, %43 : vector<8x8xf32>
    %cst_16 = arith.constant dense<0.000000e+00> : vector<8x8xf32>
    %45 = tpu.matmul %44, %29, %cst_16 {dimension_numbers = #tpu.dot_dimension_numbers<[1], [0], [0], [1], [0, 0, 1, 1], [], []>} : vector<8x8xf32>, vector<8x8xf32>, vector<8x8xf32> -> vector<8x8xf32>
    %c0_17 = arith.constant 0 : index
    %c8 = arith.constant 8 : index
    %46 = vector.load %arg6[%c0_17, %c8] : memref<16x32xf32, #tpu.memory_space<vmem>>, vector<8x8xf32>
    tpu.vector_store %arg6[%c0_17, %c8], %45 {strides = array<i32>} : memref<16x32xf32, #tpu.memory_space<vmem>>, vector<8x8xf32>,
    %47 = vector.extract_strided_slice %2 {offsets = [0, 16], sizes = [8, 8], strides = [1, 1]} : vector<16x96xf32> to vector<8x8xf32>
    %cst_18 = arith.constant 0.353553385 : f32
    %48 = vector.broadcast %cst_18 : f32 to vector<8x8xf32>
    %49 = arith.mulf %47, %48 : vector<8x8xf32>
    %50 = vector.extract_strided_slice %2 {offsets = [0, 48], sizes = [8, 8], strides = [1, 1]} : vector<16x96xf32> to vector<8x8xf32>
    %51 = vector.extract_strided_slice %2 {offsets = [0, 80], sizes = [8, 8], strides = [1, 1]} : vector<16x96xf32> to vector<8x8xf32>
    %cst_19 = arith.constant dense<0.000000e+00> : vector<8x8xf32>
    %52 = tpu.matmul %49, %50, %cst_19 {dimension_numbers = #tpu.dot_dimension_numbers<[1], [1], [0], [0], [0, 0, 1, 0], [], []>} : vector<8x8xf32>, vector<8x8xf32>, vector<8x8xf32> -> vector<8x8xf32>
    %cst_20 = arith.constant dense<0xFF800000> : vector<8xf32>
    %53 = vector.multi_reduction <maximumf>, %52, %cst_20 [1] : vector<8x8xf32> to vector<8xf32>
    %54 = vector.shape_cast %53 : vector<8xf32> to vector<8x1xf32>
    %55 = vector.broadcast %54 : vector<8x1xf32> to vector<8x8xf32>
    %56 = arith.subf %52, %55 : vector<8x8xf32>
    %57 = math.exp %56 : vector<8x8xf32>
    %cst_21 = arith.constant dense<0.000000e+00> : vector<8xf32>
    %58 = vector.multi_reduction <add>, %57, %cst_21 [1] : vector<8x8xf32> to vector<8xf32>
    %59 = vector.shape_cast %58 : vector<8xf32> to vector<8x1xf32>
    %60 = tpu.reciprocal %59 {approx = true} : vector<8x1xf32> -> vector<8x1xf32>
    %61 = arith.mulf %59, %60 : vector<8x1xf32>
    %cst_22 = arith.constant 2.000000e+00 : f32
    %62 = vector.broadcast %cst_22 : f32 to vector<8x1xf32>
    %63 = arith.subf %62, %61 : vector<8x1xf32>
    %64 = arith.mulf %60, %63 : vector<8x1xf32>
    %65 = vector.broadcast %64 : vector<8x1xf32> to vector<8x8xf32>
    %66 = arith.mulf %57, %65 : vector<8x8xf32>
    %cst_23 = arith.constant dense<0.000000e+00> : vector<8x8xf32>
    %67 = tpu.matmul %66, %51, %cst_23 {dimension_numbers = #tpu.dot_dimension_numbers<[1], [0], [0], [1], [0, 0, 1, 1], [], []>} : vector<8x8xf32>, vector<8x8xf32>, vector<8x8xf32> -> vector<8x8xf32>
    %c0_24 = arith.constant 0 : index
    %c16 = arith.constant 16 : index
    %68 = vector.load %arg6[%c0_24, %c16] : memref<16x32xf32, #tpu.memory_space<vmem>>, vector<8x8xf32>
    tpu.vector_store %arg6[%c0_24, %c16], %67 {strides = array<i32>} : memref<16x32xf32, #tpu.memory_space<vmem>>, vector<8x8xf32>,
    %69 = vector.extract_strided_slice %2 {offsets = [0, 24], sizes = [8, 8], strides = [1, 1]} : vector<16x96xf32> to vector<8x8xf32>
    %cst_25 = arith.constant 0.353553385 : f32
    %70 = vector.broadcast %cst_25 : f32 to vector<8x8xf32>
    %71 = arith.mulf %69, %70 : vector<8x8xf32>
    %72 = vector.extract_strided_slice %2 {offsets = [0, 56], sizes = [8, 8], strides = [1, 1]} : vector<16x96xf32> to vector<8x8xf32>
    %73 = vector.extract_strided_slice %2 {offsets = [0, 88], sizes = [8, 8], strides = [1, 1]} : vector<16x96xf32> to vector<8x8xf32>
    %cst_26 = arith.constant dense<0.000000e+00> : vector<8x8xf32>
    %74 = tpu.matmul %71, %72, %cst_26 {dimension_numbers = #tpu.dot_dimension_numbers<[1], [1], [0], [0], [0, 0, 1, 0], [], []>} : vector<8x8xf32>, vector<8x8xf32>, vector<8x8xf32> -> vector<8x8xf32>
    %cst_27 = arith.constant dense<0xFF800000> : vector<8xf32>
    %75 = vector.multi_reduction <maximumf>, %74, %cst_27 [1] : vector<8x8xf32> to vector<8xf32>
    %76 = vector.shape_cast %75 : vector<8xf32> to vector<8x1xf32>
    %77 = vector.broadcast %76 : vector<8x1xf32> to vector<8x8xf32>
    %78 = arith.subf %74, %77 : vector<8x8xf32>
    %79 = math.exp %78 : vector<8x8xf32>
    %cst_28 = arith.constant dense<0.000000e+00> : vector<8xf32>
    %80 = vector.multi_reduction <add>, %79, %cst_28 [1] : vector<8x8xf32> to vector<8xf32>
    %81 = vector.shape_cast %80 : vector<8xf32> to vector<8x1xf32>
    %82 = tpu.reciprocal %81 {approx = true} : vector<8x1xf32> -> vector<8x1xf32>
    %83 = arith.mulf %81, %82 : vector<8x1xf32>
    %cst_29 = arith.constant 2.000000e+00 : f32
    %84 = vector.broadcast %cst_29 : f32 to vector<8x1xf32>
    %85 = arith.subf %84, %83 : vector<8x1xf32>
    %86 = arith.mulf %82, %85 : vector<8x1xf32>
    %87 = vector.broadcast %86 : vector<8x1xf32> to vector<8x8xf32>
    %88 = arith.mulf %79, %87 : vector<8x8xf32>
    %cst_30 = arith.constant dense<0.000000e+00> : vector<8x8xf32>
    %89 = tpu.matmul %88, %73, %cst_30 {dimension_numbers = #tpu.dot_dimension_numbers<[1], [0], [0], [1], [0, 0, 1, 1], [], []>} : vector<8x8xf32>, vector<8x8xf32>, vector<8x8xf32> -> vector<8x8xf32>
    %c0_31 = arith.constant 0 : index
    %c24 = arith.constant 24 : index
    %90 = vector.load %arg6[%c0_31, %c24] : memref<16x32xf32, #tpu.memory_space<vmem>>, vector<8x8xf32>
    tpu.vector_store %arg6[%c0_31, %c24], %89 {strides = array<i32>} : memref<16x32xf32, #tpu.memory_space<vmem>>, vector<8x8xf32>,
    %91 = vector.extract_strided_slice %2 {offsets = [8, 0], sizes = [8, 8], strides = [1, 1]} : vector<16x96xf32> to vector<8x8xf32>
    %cst_32 = arith.constant 0.353553385 : f32
    %92 = vector.broadcast %cst_32 : f32 to vector<8x8xf32>
    %93 = arith.mulf %91, %92 : vector<8x8xf32>
    %94 = vector.extract_strided_slice %2 {offsets = [8, 32], sizes = [8, 8], strides = [1, 1]} : vector<16x96xf32> to vector<8x8xf32>
    %95 = vector.extract_strided_slice %2 {offsets = [8, 64], sizes = [8, 8], strides = [1, 1]} : vector<16x96xf32> to vector<8x8xf32>
    %cst_33 = arith.constant dense<0.000000e+00> : vector<8x8xf32>
    %96 = tpu.matmul %93, %94, %cst_33 {dimension_numbers = #tpu.dot_dimension_numbers<[1], [1], [0], [0], [0, 0, 1, 0], [], []>} : vector<8x8xf32>, vector<8x8xf32>, vector<8x8xf32> -> vector<8x8xf32>
    %cst_34 = arith.constant dense<0xFF800000> : vector<8xf32>
    %97 = vector.multi_reduction <maximumf>, %96, %cst_34 [1] : vector<8x8xf32> to vector<8xf32>
    %98 = vector.shape_cast %97 : vector<8xf32> to vector<8x1xf32>
    %99 = vector.broadcast %98 : vector<8x1xf32> to vector<8x8xf32>
    %100 = arith.subf %96, %99 : vector<8x8xf32>
    %101 = math.exp %100 : vector<8x8xf32>
    %cst_35 = arith.constant dense<0.000000e+00> : vector<8xf32>
    %102 = vector.multi_reduction <add>, %101, %cst_35 [1] : vector<8x8xf32> to vector<8xf32>
    %103 = vector.shape_cast %102 : vector<8xf32> to vector<8x1xf32>
    %104 = tpu.reciprocal %103 {approx = true} : vector<8x1xf32> -> vector<8x1xf32>
    %105 = arith.mulf %103, %104 : vector<8x1xf32>
    %cst_36 = arith.constant 2.000000e+00 : f32
    %106 = vector.broadcast %cst_36 : f32 to vector<8x1xf32>
    %107 = arith.subf %106, %105 : vector<8x1xf32>
    %108 = arith.mulf %104, %107 : vector<8x1xf32>
    %109 = vector.broadcast %108 : vector<8x1xf32> to vector<8x8xf32>
    %110 = arith.mulf %101, %109 : vector<8x8xf32>
    %cst_37 = arith.constant dense<0.000000e+00> : vector<8x8xf32>
    %111 = tpu.matmul %110, %95, %cst_37 {dimension_numbers = #tpu.dot_dimension_numbers<[1], [0], [0], [1], [0, 0, 1, 1], [], []>} : vector<8x8xf32>, vector<8x8xf32>, vector<8x8xf32> -> vector<8x8xf32>
    %c8_38 = arith.constant 8 : index
    %c0_39 = arith.constant 0 : index
    %112 = vector.load %arg6[%c8_38, %c0_39] : memref<16x32xf32, #tpu.memory_space<vmem>>, vector<8x8xf32>
    tpu.vector_store %arg6[%c8_38, %c0_39], %111 {strides = array<i32>} : memref<16x32xf32, #tpu.memory_space<vmem>>, vector<8x8xf32>,
    %113 = vector.extract_strided_slice %2 {offsets = [8, 8], sizes = [8, 8], strides = [1, 1]} : vector<16x96xf32> to vector<8x8xf32>
    %cst_40 = arith.constant 0.353553385 : f32
    %114 = vector.broadcast %cst_40 : f32 to vector<8x8xf32>
    %115 = arith.mulf %113, %114 : vector<8x8xf32>
    %116 = vector.extract_strided_slice %2 {offsets = [8, 40], sizes = [8, 8], strides = [1, 1]} : vector<16x96xf32> to vector<8x8xf32>
    %117 = vector.extract_strided_slice %2 {offsets = [8, 72], sizes = [8, 8], strides = [1, 1]} : vector<16x96xf32> to vector<8x8xf32>
    %cst_41 = arith.constant dense<0.000000e+00> : vector<8x8xf32>
    %118 = tpu.matmul %115, %116, %cst_41 {dimension_numbers = #tpu.dot_dimension_numbers<[1], [1], [0], [0], [0, 0, 1, 0], [], []>} : vector<8x8xf32>, vector<8x8xf32>, vector<8x8xf32> -> vector<8x8xf32>
    %cst_42 = arith.constant dense<0xFF800000> : vector<8xf32>
    %119 = vector.multi_reduction <maximumf>, %118, %cst_42 [1] : vector<8x8xf32> to vector<8xf32>
    %120 = vector.shape_cast %119 : vector<8xf32> to vector<8x1xf32>
    %121 = vector.broadcast %120 : vector<8x1xf32> to vector<8x8xf32>
    %122 = arith.subf %118, %121 : vector<8x8xf32>
    %123 = math.exp %122 : vector<8x8xf32>
    %cst_43 = arith.constant dense<0.000000e+00> : vector<8xf32>
    %124 = vector.multi_reduction <add>, %123, %cst_43 [1] : vector<8x8xf32> to vector<8xf32>
    %125 = vector.shape_cast %124 : vector<8xf32> to vector<8x1xf32>
    %126 = tpu.reciprocal %125 {approx = true} : vector<8x1xf32> -> vector<8x1xf32>
    %127 = arith.mulf %125, %126 : vector<8x1xf32>
    %cst_44 = arith.constant 2.000000e+00 : f32
    %128 = vector.broadcast %cst_44 : f32 to vector<8x1xf32>
    %129 = arith.subf %128, %127 : vector<8x1xf32>
    %130 = arith.mulf %126, %129 : vector<8x1xf32>
    %131 = vector.broadcast %130 : vector<8x1xf32> to vector<8x8xf32>
    %132 = arith.mulf %123, %131 : vector<8x8xf32>
    %cst_45 = arith.constant dense<0.000000e+00> : vector<8x8xf32>
    %133 = tpu.matmul %132, %117, %cst_45 {dimension_numbers = #tpu.dot_dimension_numbers<[1], [0], [0], [1], [0, 0, 1, 1], [], []>} : vector<8x8xf32>, vector<8x8xf32>, vector<8x8xf32> -> vector<8x8xf32>
    %c8_46 = arith.constant 8 : index
    %c8_47 = arith.constant 8 : index
    %134 = vector.load %arg6[%c8_46, %c8_47] : memref<16x32xf32, #tpu.memory_space<vmem>>, vector<8x8xf32>
    tpu.vector_store %arg6[%c8_46, %c8_47], %133 {strides = array<i32>} : memref<16x32xf32, #tpu.memory_space<vmem>>, vector<8x8xf32>,
    %135 = vector.extract_strided_slice %2 {offsets = [8, 16], sizes = [8, 8], strides = [1, 1]} : vector<16x96xf32> to vector<8x8xf32>
    %cst_48 = arith.constant 0.353553385 : f32
    %136 = vector.broadcast %cst_48 : f32 to vector<8x8xf32>
    %137 = arith.mulf %135, %136 : vector<8x8xf32>
    %138 = vector.extract_strided_slice %2 {offsets = [8, 48], sizes = [8, 8], strides = [1, 1]} : vector<16x96xf32> to vector<8x8xf32>
    %139 = vector.extract_strided_slice %2 {offsets = [8, 80], sizes = [8, 8], strides = [1, 1]} : vector<16x96xf32> to vector<8x8xf32>
    %cst_49 = arith.constant dense<0.000000e+00> : vector<8x8xf32>
    %140 = tpu.matmul %137, %138, %cst_49 {dimension_numbers = #tpu.dot_dimension_numbers<[1], [1], [0], [0], [0, 0, 1, 0], [], []>} : vector<8x8xf32>, vector<8x8xf32>, vector<8x8xf32> -> vector<8x8xf32>
    %cst_50 = arith.constant dense<0xFF800000> : vector<8xf32>
    %141 = vector.multi_reduction <maximumf>, %140, %cst_50 [1] : vector<8x8xf32> to vector<8xf32>
    %142 = vector.shape_cast %141 : vector<8xf32> to vector<8x1xf32>
    %143 = vector.broadcast %142 : vector<8x1xf32> to vector<8x8xf32>
    %144 = arith.subf %140, %143 : vector<8x8xf32>
    %145 = math.exp %144 : vector<8x8xf32>
    %cst_51 = arith.constant dense<0.000000e+00> : vector<8xf32>
    %146 = vector.multi_reduction <add>, %145, %cst_51 [1] : vector<8x8xf32> to vector<8xf32>
    %147 = vector.shape_cast %146 : vector<8xf32> to vector<8x1xf32>
    %148 = tpu.reciprocal %147 {approx = true} : vector<8x1xf32> -> vector<8x1xf32>
    %149 = arith.mulf %147, %148 : vector<8x1xf32>
    %cst_52 = arith.constant 2.000000e+00 : f32
    %150 = vector.broadcast %cst_52 : f32 to vector<8x1xf32>
    %151 = arith.subf %150, %149 : vector<8x1xf32>
    %152 = arith.mulf %148, %151 : vector<8x1xf32>
    %153 = vector.broadcast %152 : vector<8x1xf32> to vector<8x8xf32>
    %154 = arith.mulf %145, %153 : vector<8x8xf32>
    %cst_53 = arith.constant dense<0.000000e+00> : vector<8x8xf32>
    %155 = tpu.matmul %154, %139, %cst_53 {dimension_numbers = #tpu.dot_dimension_numbers<[1], [0], [0], [1], [0, 0, 1, 1], [], []>} : vector<8x8xf32>, vector<8x8xf32>, vector<8x8xf32> -> vector<8x8xf32>
    %c8_54 = arith.constant 8 : index
    %c16_55 = arith.constant 16 : index
    %156 = vector.load %arg6[%c8_54, %c16_55] : memref<16x32xf32, #tpu.memory_space<vmem>>, vector<8x8xf32>
    tpu.vector_store %arg6[%c8_54, %c16_55], %155 {strides = array<i32>} : memref<16x32xf32, #tpu.memory_space<vmem>>, vector<8x8xf32>,
    %157 = vector.extract_strided_slice %2 {offsets = [8, 24], sizes = [8, 8], strides = [1, 1]} : vector<16x96xf32> to vector<8x8xf32>
    %cst_56 = arith.constant 0.353553385 : f32
    %158 = vector.broadcast %cst_56 : f32 to vector<8x8xf32>
    %159 = arith.mulf %157, %158 : vector<8x8xf32>
    %160 = vector.extract_strided_slice %2 {offsets = [8, 56], sizes = [8, 8], strides = [1, 1]} : vector<16x96xf32> to vector<8x8xf32>
    %161 = vector.extract_strided_slice %2 {offsets = [8, 88], sizes = [8, 8], strides = [1, 1]} : vector<16x96xf32> to vector<8x8xf32>
    %cst_57 = arith.constant dense<0.000000e+00> : vector<8x8xf32>
    %162 = tpu.matmul %159, %160, %cst_57 {dimension_numbers = #tpu.dot_dimension_numbers<[1], [1], [0], [0], [0, 0, 1, 0], [], []>} : vector<8x8xf32>, vector<8x8xf32>, vector<8x8xf32> -> vector<8x8xf32>
    %cst_58 = arith.constant dense<0xFF800000> : vector<8xf32>
    %163 = vector.multi_reduction <maximumf>, %162, %cst_58 [1] : vector<8x8xf32> to vector<8xf32>
    %164 = vector.shape_cast %163 : vector<8xf32> to vector<8x1xf32>
    %165 = vector.broadcast %164 : vector<8x1xf32> to vector<8x8xf32>
    %166 = arith.subf %162, %165 : vector<8x8xf32>
    %167 = math.exp %166 : vector<8x8xf32>
    %cst_59 = arith.constant dense<0.000000e+00> : vector<8xf32>
    %168 = vector.multi_reduction <add>, %167, %cst_59 [1] : vector<8x8xf32> to vector<8xf32>
    %169 = vector.shape_cast %168 : vector<8xf32> to vector<8x1xf32>
    %170 = tpu.reciprocal %169 {approx = true} : vector<8x1xf32> -> vector<8x1xf32>
    %171 = arith.mulf %169, %170 : vector<8x1xf32>
    %cst_60 = arith.constant 2.000000e+00 : f32
    %172 = vector.broadcast %cst_60 : f32 to vector<8x1xf32>
    %173 = arith.subf %172, %171 : vector<8x1xf32>
    %174 = arith.mulf %170, %173 : vector<8x1xf32>
    %175 = vector.broadcast %174 : vector<8x1xf32> to vector<8x8xf32>
    %176 = arith.mulf %167, %175 : vector<8x8xf32>
    %cst_61 = arith.constant dense<0.000000e+00> : vector<8x8xf32>
    %177 = tpu.matmul %176, %161, %cst_61 {dimension_numbers = #tpu.dot_dimension_numbers<[1], [0], [0], [1], [0, 0, 1, 1], [], []>} : vector<8x8xf32>, vector<8x8xf32>, vector<8x8xf32> -> vector<8x8xf32>
    %c8_62 = arith.constant 8 : index
    %c24_63 = arith.constant 24 : index
    %178 = vector.load %arg6[%c8_62, %c24_63] : memref<16x32xf32, #tpu.memory_space<vmem>>, vector<8x8xf32>
    tpu.vector_store %arg6[%c8_62, %c24_63], %177 {strides = array<i32>} : memref<16x32xf32, #tpu.memory_space<vmem>>, vector<8x8xf32>,
    %c0_64 = arith.constant 0 : index
    %c0_65 = arith.constant 0 : index
    %179 = vector.load %arg6[%c0_64, %c0_65] : memref<16x32xf32, #tpu.memory_space<vmem>>, vector<16x32xf32>
    %c0_66 = arith.constant 0 : index
    %c0_67 = arith.constant 0 : index
    %180 = vector.load %arg3[%c0_66, %c0_67] : memref<32x32xf32, #tpu.memory_space<vmem>>, vector<32x32xf32>
    %cst_68 = arith.constant dense<0.000000e+00> : vector<16x32xf32>
    %181 = tpu.matmul %179, %180, %cst_68 {dimension_numbers = #tpu.dot_dimension_numbers<[1], [0], [0], [1], [0, 0, 1, 1], [], []>} : vector<16x32xf32>, vector<32x32xf32>, vector<16x32xf32> -> vector<16x32xf32>
    %c0_69 = arith.constant 0 : index
    %c0_70 = arith.constant 0 : index
    %182 = vector.load %arg4[%c0_69, %c0_70] : memref<1x32xf32, #tpu.memory_space<vmem>>, vector<1x32xf32>
    %183 = vector.broadcast %182 : vector<1x32xf32> to vector<16x32xf32>
    %184 = arith.addf %181, %183 : vector<16x32xf32>
    %c0_71 = arith.constant 0 : index
    %c0_72 = arith.constant 0 : index
    %185 = vector.load %arg5[%c0_71, %c0_72] : memref<16x32xf32, #tpu.memory_space<vmem>>, vector<16x32xf32>
    tpu.vector_store %arg5[%c0_71, %c0_72], %184 {strides = array<i32>} : memref<16x32xf32, #tpu.memory_space<vmem>>, vector<16x32xf32>,
    return
  }
  func.func @transform_0(%arg0: i32) -> (i32, i32) {
    %c0_i32 = arith.constant 0 : i32
    %c0_i32_0 = arith.constant 0 : i32
    return %arg0, %c0_i32 : i32, i32
  }
  func.func @transform_1(%arg0: i32) -> (i32, i32) {
    %c0_i32 = arith.constant 0 : i32
    %c0_i32_0 = arith.constant 0 : i32
    %c0_i32_1 = arith.constant 0 : i32
    return %c0_i32, %c0_i32_0 : i32, i32
  }
  func.func @transform_2(%arg0: i32) -> (i32, i32) {
    %c0_i32 = arith.constant 0 : i32
    %c0_i32_0 = arith.constant 0 : i32
    %c0_i32_1 = arith.constant 0 : i32
    return %c0_i32, %c0_i32_0 : i32, i32
  }
  func.func @transform_3(%arg0: i32) -> (i32, i32) {
    %c0_i32 = arith.constant 0 : i32
    %c0_i32_0 = arith.constant 0 : i32
    %c0_i32_1 = arith.constant 0 : i32
    return %c0_i32, %c0_i32_0 : i32, i32
  }
  func.func @transform_4(%arg0: i32) -> (i32, i32) {
    %c0_i32 = arith.constant 0 : i32
    %c0_i32_0 = arith.constant 0 : i32
    return %arg0, %c0_i32 : i32, i32
  }
}

</mosaic_0001>

<bundles_post_ra>
// kernel: tpu_custom_call.1
= control target key start
LH: loop header
LB: loop body
LE: loop exit
PB: predicated region body
PF: predicated region fallthrough
CT: control target
= control target key end

     0   :  { %9 = vsyncpa [#allocation4], 0  ;;  %s2251_s0 = inlined_call_operand.hbm [shape: f32[16,32], index: 0, kind: input, shape index: {}]   ;;  %s2252_s1 = inlined_call_operand.hbm [shape: f32[32,96], index: 1, kind: input, shape index: {}]   ;;  %s2253_s2 = inlined_call_operand.hbm [shape: f32[32,32], index: 2, kind: input, shape index: {}]   ;;  %s2254_s3 = inlined_call_operand.vmem [shape: f32[1,32], index: 3, kind: input, shape index: {}]   ;;  %s2255_s4 = inlined_call_operand.hbm [shape: f32[16,32], index: 4, kind: output, shape index: {}]  }
   0x1   :  { %10 = vsyncpa [#allocation7], 0 }
   0x2   :  { %11 = vsyncpa [#allocation5], 0  ;;  %s1981_s15 = smov [#allocation6]   ;;  %s1982_s17 = smov [#allocation3]  }
   0x3   :  { %s29_s16 = sshll.u32 %s1981_s15, 4  ;;  %s17_s18 = sshll.u32 %s1982_s17, 4  ;;  %s30_s16 = int_to_ptr.vmem [resolvable:$true] %s29_s16  ;;  %s2027_s18 = int_to_ptr.vmem [resolvable:$true] %s17_s18 }
   0x4   :  { %s1887_s21 = scalar_lea.hbm %s2252_s1, 512 }
   0x5   :  { %p1888_p0 = scmp.ne.s32.totalorder %s2252_s1, %s1887_s21  ;;  %p1891_p1 = scmp.lt.u32.totalorder %s1887_s21, %s2252_s1 }
   0x7   :  { %p1893_p2 = pnand %p1891_p1, %p1888_p0 }
   0x9   :  { %1896 = shalt.err (!%p1893_p2)
}
   0xa   :  { %s1897_s26 = scalar_lea.vmem %s30_s16, 512  ;;  %p1902_p4 = scmp.lt.s32.totalorder %s30_s16, %s30_s16 }
   0xb   :  { %p1898_p3 = scmp.ne.s32.totalorder %s30_s16, %s1897_s26  ;;  %p1903_p5 = scmp.lt.s32.totalorder %s1897_s26, %s1897_s26 }
   0xd   :  { %p1904_p6 = por %p1903_p5, %p1902_p4 }
   0xf   :  { %p1905_p7 = pnand %p1904_p6, %p1898_p3 }
  0x11   :  { %1908 = shalt.err (!%p1905_p7)
}
  0x12   :  { %s1983_s27 = smov 128   ;;  %s1984_s28 = smov 8  }
  0x13   :  { %35 = dma.hbm_to_vmem [thread:$0]  %s2252_s1, 512, %s30_s16, [#allocation7], %s1983_s27, %s1983_s27, %s1984_s28  }
  0x14   :  { %s1909_s7 = scalar_lea.hbm %s2251_s0, 256 }
  0x15   :  { %p1910_p8 = scmp.ne.s32.totalorder %s2251_s0, %s1909_s7  ;;  %p1913_p9 = scmp.lt.u32.totalorder %s1909_s7, %s2251_s0 }
  0x17   :  { %p1915_p10 = pnand %p1913_p9, %p1910_p8 }
  0x19   :  { %1918 = shalt.err (!%p1915_p10)
}
  0x1a   :  { %s1919_s12 = scalar_lea.vmem %s2027_s18, 256  ;;  %p1924_p12 = scmp.lt.s32.totalorder %s2027_s18, %s2027_s18 }
  0x1b   :  { %p1920_p11 = scmp.ne.s32.totalorder %s2027_s18, %s1919_s12  ;;  %p1925_p13 = scmp.lt.s32.totalorder %s1919_s12, %s1919_s12 }
  0x1d   :  { %p1926_p0 = por %p1925_p13, %p1924_p12 }
  0x1f   :  { %p1927_p1 = pnand %p1926_p0, %p1920_p11 }
  0x21   :  { %1930 = shalt.err (!%p1927_p1)
}
  0x22   :  { %23 = dma.hbm_to_vmem [thread:$0]  %s2251_s0, 256, %s2027_s18, [#allocation4], %s1983_s27, %s1983_s27, %s1984_s28  }
  0x23   :  { %s1985_s14 = smov [#allocation8]   ;;  %s1931_s19 = scalar_lea.hbm %s2253_s2, 512 }
  0x24   :  { %s41_s15 = sshll.u32 %s1985_s14, 4  ;;  %p1932_p2 = scmp.ne.s32.totalorder %s2253_s2, %s1931_s19  ;;  %s42_s15 = int_to_ptr.vmem [resolvable:$true] %s41_s15 }
  0x25   :  { %p1935_p3 = scmp.lt.u32.totalorder %s1931_s19, %s2253_s2 }
  0x27   :  { %p1937_p4 = pnand %p1935_p3, %p1932_p2 }
  0x29   :  { %1940 = shalt.err (!%p1937_p4)
}
  0x2a   :  { %s1941_s24 = scalar_lea.vmem %s42_s15, 512  ;;  %p1946_p6 = scmp.lt.s32.totalorder %s42_s15, %s42_s15 }
  0x2b   :  { %p1942_p5 = scmp.ne.s32.totalorder %s42_s15, %s1941_s24  ;;  %p1947_p7 = scmp.lt.s32.totalorder %s1941_s24, %s1941_s24 }
  0x2d   :  { %p1948_p8 = por %p1947_p7, %p1946_p6 }
  0x2f   :  { %p1949_p9 = pnand %p1948_p8, %p1942_p5 }
  0x31   :  { %1952 = shalt.err (!%p1949_p9)
}
  0x32   :  { %47 = dma.hbm_to_vmem [thread:$0]  %s2253_s2, 512, %s42_s15, [#allocation7], %s1983_s27, %s1983_s27, %s1984_s28  }
  0x33   :  { %1975 = dma.done.wait [#allocation4], 256  }
  0x34   :  { %1976 = vsyncadd [#allocation4], 4294967040 }
  0x35   :  { %1977 = dma.done.wait [#allocation7], 1024  }
  0x36   :  { %1978 = vsyncadd [#allocation7], 4294966272  ;;  %vm65_vm0 = vcmask 261120   ;;  %v61_v0 = vld [vmem:[#allocation6] sm:$0xff]  ;;  %v62_v1 = vld [vmem:[#allocation6 + $0x8] sm:$0xff]  ;;  %v1986_v8 = vmov 0.0  }
  0x37   :  { %v63_v2 = vld [vmem:[#allocation6 + $0x10] sm:$0xff]  ;;  %v1818_v3 = vpack.c.bf16 %v62_v1, %v61_v0  ;;  %v64_v4 = vld [vmem:[#allocation6 + $0x18] sm:$0xff]  ;;  %1727 = vmatprep.subr.mxu1 %v1986_v8  ;;  %vm1987_vm1 = vmmov 0   ;;  %s1988_s2 = smov 64   ;;  %s1989_s25 = smov 96   ;;  %vm151_vm2 = vcmask 64512  }
  0x38   :  { %v59_v5 = vld [vmem:[#allocation3] sm:$0xff]  ;;  %v1822_v6 = vpack.c.bf16 %v64_v4, %v63_v2  ;;  %v60_v7 = vld [vmem:[#allocation3 + $0x8] sm:$0xff]  ;;  %1729 = vmatprep.mubr.msk.f32.mxu1 %vm1987_vm1, %v1986_v8  ;;  %s1990_s26 = smov 88   ;;  %s1991_s29 = smov 120   ;;  %vm490_vm3 = vcmask 130112   ;;  %vm664_vm4 = vcmask 195712  }
  0x39   :  { %1724 = vmatprep.mubr.msk.f32.mxu0 %vm65_vm0, %v59_v5  ;;  %1819 = vmatprep.subr.bf16.mxu0 %v1818_v3  ;;  %s1992_s30 = smov 80   ;;  %s1993_s5 = smov 72   ;;  %vm838_vm5 = vcmask 261312  }
  0x3a   :  { %1821 = vmatpush3.bf16.msra.mxu0 %v1818_v3  ;;  %s1994_s6 = smov 112   ;;  %s1995_s7 = smov 104  }
  0x3b   :  { %1823 = vmatprep.subr.bf16.mxu0 %v1822_v6  ;;  %s1996_s8 = smov 48   ;;  %s1997_s9 = smov 56  }
  0x3c   :  { %s1998_s10 = smov 40   ;;  %s1999_s11 = smov 16  }
  0x3d   :  { %s2000_s12 = smov 24   ;;  %s2001_s14 = smov [#allocation9]  }
  0x3e   :  { %1825 = vmatpush3.bf16.msra.mxu0 %v1822_v6  ;;  %s1630_s15 = sshll.u32 %s2001_s14, 4  ;;  %s1631_s15 = int_to_ptr.vmem [resolvable:$true] %s1630_s15 }
  0x3f   :  { %1747 = vmatprep.subr.mxu0 %v1986_v8  ;;  %s1953_s16 = scalar_lea.vmem %s1631_s15, 256  ;;  %p1958_p11 = scmp.lt.s32.totalorder %s1631_s15, %s1631_s15 }
  0x40   :  { %p1954_p10 = scmp.ne.s32.totalorder %s1631_s15, %s1953_s16  ;;  %p1959_p12 = scmp.lt.s32.totalorder %s1953_s16, %s1953_s16 }
  0x41   :  { %1725 = vmatmul.mubr.msk.f32.vlgmr.msra.gmra.mrb[0].mxu0 %vm65_vm0, %v60_v7 }
  0x42   :  { %1749 = vmatprep.mubr.msk.f32.mxu0 %vm1987_vm1, %v1986_v8  ;;  %p1960_p13 = por %p1959_p12, %p1958_p11 }
  0x44   :  { %p1961_p0 = pnand %p1960_p13, %p1954_p10 }
 0x114   :  { %v2087_v9 = vpop.f32.mrb[0].mxu0 }
 0x115   :  { %v2089_v10 = vpop.f32.mrb[1].mxu0  ;;  %v840_v20 = vmul.f32 0.35355338, %v2087_v9 }
 0x116   :  { %241 = vrot.lane.b32.xlu1 %v2089_v10, %s1988_s2  ;;  %149 = vrot.lane.b32.xlu0 %v2089_v10, %s1989_s25  ;;  %v147_v11 = vmul.f32 0.35355338, %v2089_v10 }
 0x11a   :  { %320 = vrot.lane.b32.xlu1 %v2089_v10, %s1990_s26 }
 0x11e   :  { %318 = vrot.lane.b32.xlu1 %v147_v11, %s1991_s29 }
 0x122   :  { %494 = vrot.lane.b32.xlu1 %v2089_v10, %s1992_s30 }
 0x188   :  { %v242_v12 = vpop.permute.xlu1 %241  ;;  %v150_v13 = vpop.permute.xlu0 %149 }
 0x189   :  { %1728 = vmatpush3.xpose.msk.msra.mxu1 %vm151_vm2, %v150_v13 }
 0x18a   :  { %1732 = vmatprep.subr.mxu1 %v1986_v8 }
 0x18c   :  { %v321_v14 = vpop.permute.xlu1 %320  ;;  %1730 = vmatmul.mubr.msk.f32.vlgmr.msra.gmra.mrb[0].mxu1 %vm151_vm2, %v147_v11 }
 0x18d   :  { %1733 = vmatpush3.msra.mxu1 %v242_v12  ;;  %1734 = vmatprep.mubr.msk.f32.mxu1 %vm1987_vm1, %v1986_v8 }
 0x18e   :  { %1737 = vmatprep.subr.mxu1 %v1986_v8 }
 0x190   :  { %v319_v15 = vpop.permute.xlu1 %318 }
 0x194   :  { %v495_v16 = vpop.permute.xlu1 %494 }
 0x195   :  { %1748 = vmatpush3.xpose.msk.msra.mxu0 %vm151_vm2, %v495_v16 }
 0x196   :  { %1757 = vmatprep.subr.mxu0 %v1986_v8 }
 0x25f   :  { %v223_v17 = vpop.f32.mrb[0].mxu1 }
 0x260   :  { %v1731_v18 = vpop.f32.mrb[1].mxu1  ;;  %v227_v19 = vsel %vm151_vm2, %v223_v17, -inf }
 0x261   :  { %228 = vmax.xlane.f32.xlu0 %v227_v19 }
 0x277   :  { %668 = vrot.lane.b32.xlu0 %v2089_v10, %s1993_s5 }
 0x27b   :  { %1183 = vrot.lane.b32.xlu0 %v840_v20, %s1994_s6 }
 0x27f   :  { %1356 = vrot.lane.b32.xlu0 %v840_v20, %s1995_s7 }
 0x2ee   :  { %v229_v21 = vpop.xlane.xlu0 %228 }
 0x2ef   :  { %v230_v22 = vsub.f32 %v223_v17, %v229_v21 }
 0x2f1   :  { %v231_v23 = vmul.f32 1.442695, %v230_v22 }
 0x2f2   :  { %v669_v28 = vpop.permute.xlu0 %668 }
 0x2f3   :  { %1855 = vpow2.f32 %v231_v23 }
 0x2f6   :  { %v1184_v39 = vpop.permute.xlu0 %1183 }
 0x2fa   :  { %v1357_v41 = vpop.permute.xlu0 %1356 }
 0x2fd   :  { %v1856_v24 = vpop.eup %1855 }
 0x2fe   :  { %v233_v25 = vsel %vm151_vm2, %v1856_v24, 0.0 }
 0x2ff   :  { %234 = vadd.xlane.f32.xlu1 %v233_v25 }
 0x310   :  { %492 = vrot.lane.b32.xlu1 %v147_v11, %s1994_s6 }
 0x314   :  { %666 = vrot.lane.b32.xlu1 %v147_v11, %s1995_s7 }
 0x318   :  { %842 = vrot.lane.b32.xlu1 %v2087_v9, %s1989_s25 }
 0x31c   :  { %1012 = vrot.lane.b32.xlu1 %v2087_v9, %s1990_s26 }
 0x320   :  { %1010 = vrot.lane.b32.xlu1 %v840_v20, %s1991_s29 }
 0x324   :  { %1185 = vrot.lane.b32.xlu1 %v2087_v9, %s1992_s30 }
 0x328   :  { %1358 = vrot.lane.b32.xlu1 %v2087_v9, %s1993_s5 }
 0x38c   :  { %v235_v26 = vpop.xlane.xlu1 %234 }
 0x38d   :  { %1857 = vrcp.f32 %v235_v26 }
 0x390   :  { %v493_v27 = vpop.permute.xlu1 %492 }
 0x391   :  { %1750 = vmatmul.mubr.msk.f32.vlgmr.msra.gmra.mrb[2].mxu0 %vm151_vm2, %v493_v27 }
 0x392   :  { %1758 = vmatpush3.xpose.msk.msra.mxu0 %vm151_vm2, %v669_v28  ;;  %1759 = vmatprep.mubr.msk.f32.mxu0 %vm1987_vm1, %v1986_v8 }
 0x393   :  { %1767 = vmatprep.subr.mxu0 %v1986_v8 }
 0x394   :  { %v667_v29 = vpop.permute.xlu1 %666 }
 0x395   :  { %1760 = vmatmul.mubr.msk.f32.vlgmr.msra.gmra.mrb[4].mxu0 %vm151_vm2, %v667_v29 }
 0x396   :  { %1769 = vmatprep.mubr.msk.f32.mxu0 %vm1987_vm1, %v1986_v8 }
 0x397   :  { %v1858_v30 = vpop.eup %1857 }
 0x398   :  { %v237_v31 = vmul.f32 %v1858_v30, %v235_v26  ;;  %v843_v32 = vpop.permute.xlu1 %842 }
 0x399   :  { %1768 = vmatpush3.xpose.msk.msra.mxu0 %vm151_vm2, %v843_v32 }
 0x39a   :  { %v238_v33 = vsub.f32 2.0, %v237_v31  ;;  %1777 = vmatprep.subr.mxu0 %v1986_v8 }
 0x39c   :  { %v239_v34 = vmul.f32 %v1858_v30, %v238_v33  ;;  %v1013_v35 = vpop.permute.xlu1 %1012  ;;  %1770 = vmatmul.mubr.msk.f32.vlgmr.msra.gmra.mrb[6].mxu0 %vm151_vm2, %v840_v20 }
 0x39d   :  { %1778 = vmatpush3.xpose.msk.msra.mxu0 %vm151_vm2, %v1013_v35  ;;  %1779 = vmatprep.mubr.msk.f32.mxu0 %vm1987_vm1, %v1986_v8 }
 0x39e   :  { %v240_v36 = vmul.f32 %v1856_v24, %v239_v34  ;;  %1787 = vmatprep.subr.mxu0 %v1986_v8 }
 0x3a0   :  { %1735 = vmatmul.mubr.msk.f32.vlgmr.msra.gmra.mrb[2].mxu1 %vm151_vm2, %v240_v36  ;;  %v1011_v37 = vpop.permute.xlu1 %1010 }
 0x3a1   :  { %1738 = vmatpush3.xpose.msk.msra.mxu1 %vm151_vm2, %v321_v14  ;;  %1780 = vmatmul.mubr.msk.f32.vlgmr.msra.gmra.mrb[8].mxu0 %vm151_vm2, %v1011_v37 }
 0x3a2   :  { %1739 = vmatprep.mubr.msk.f32.mxu1 %vm1987_vm1, %v1986_v8  ;;  %1789 = vmatprep.mubr.msk.f32.mxu0 %vm1987_vm1, %v1986_v8 }
 0x3a3   :  { %1742 = vmatprep.subr.mxu1 %v1986_v8 }
 0x3a4   :  { %1740 = vmatmul.mubr.msk.f32.vlgmr.msra.gmra.mrb[4].mxu1 %vm151_vm2, %v319_v15  ;;  %v1186_v38 = vpop.permute.xlu1 %1185 }
 0x3a5   :  { %1788 = vmatpush3.xpose.msk.msra.mxu0 %vm151_vm2, %v1186_v38  ;;  %1744 = vmatprep.mubr.msk.f32.mxu1 %vm1987_vm1, %v1986_v8 }
 0x3a6   :  { %1797 = vmatprep.subr.mxu0 %v1986_v8 }
 0x3a8   :  { %v1359_v40 = vpop.permute.xlu1 %1358  ;;  %1790 = vmatmul.mubr.msk.f32.vlgmr.msra.gmra.mrb[10].mxu0 %vm151_vm2, %v1184_v39 }
 0x3a9   :  { %1798 = vmatpush3.xpose.msk.msra.mxu0 %vm151_vm2, %v1359_v40  ;;  %1799 = vmatprep.mubr.msk.f32.mxu0 %vm1987_vm1, %v1986_v8 }
 0x3ac   :  { %1800 = vmatmul.mubr.msk.f32.vlgmr.msra.gmra.mrb[12].mxu0 %vm151_vm2, %v1357_v41 }
 0x464   :  { %v566_v42 = vpop.f32.mrb[2].mxu0 }
 0x465   :  { %v1751_v43 = vpop.f32.mrb[3].mxu0  ;;  %v570_v44 = vsel %vm151_vm2, %v566_v42, -inf }
 0x466   :  { %571 = vmax.xlane.f32.xlu0 %v570_v44 }
 0x468   :  { %v740_v45 = vpop.f32.mrb[4].mxu0 }
 0x469   :  { %v1761_v46 = vpop.f32.mrb[5].mxu0  ;;  %v744_v47 = vsel %vm151_vm2, %v740_v45, -inf }
 0x46a   :  { %745 = vmax.xlane.f32.xlu0 %v744_v47 }
 0x46f   :  { %v915_v48 = vpop.f32.mrb[6].mxu0 }
 0x470   :  { %v1771_v49 = vpop.f32.mrb[7].mxu0  ;;  %v919_v60 = vsel %vm151_vm2, %v915_v48, -inf }
 0x473   :  { %v313_v50 = vpop.f32.mrb[2].mxu1 }
 0x474   :  { %317 = vst.msk [vmem:[#allocation2] sm:$0xff] %vm151_vm2, %v313_v50  ;;  %v1736_v51 = vpop.f32.mrb[3].mxu1  ;;  %v1084_v52 = vpop.f32.mrb[8].mxu0 }
 0x475   :  { %v1781_v53 = vpop.f32.mrb[9].mxu0  ;;  %v1088_v54 = vsel %vm151_vm2, %v1084_v52, -inf }
 0x476   :  { %1089 = vmax.xlane.f32.xlu0 %v1088_v54 }
 0x477   :  { %v392_v55 = vpop.f32.mrb[4].mxu1 }
 0x478   :  { %v1741_v56 = vpop.f32.mrb[5].mxu1  ;;  %v396_v57 = vsel %vm151_vm2, %v392_v55, -inf }
 0x479   :  { %397 = vmax.xlane.f32.xlu1 %v396_v57 }
 0x47b   :  { %v1257_v58 = vpop.f32.mrb[10].mxu0 }
 0x47c   :  { %v1791_v59 = vpop.f32.mrb[11].mxu0  ;;  %v1261_v0 = vsel %vm151_vm2, %v1257_v58, -inf }
 0x47d   :  { %920 = vmax.xlane.f32.xlu1 %v919_v60 }
 0x47f   :  { %v1430_v61 = vpop.f32.mrb[12].mxu0 }
 0x480   :  { %v1801_v62 = vpop.f32.mrb[13].mxu0  ;;  %v1434_v63 = vsel %vm151_vm2, %v1430_v61, -inf }
 0x481   :  { %1435 = vmax.xlane.f32.xlu0 %v1434_v63  ;;  %1262 = vmax.xlane.f32.xlu1 %v1261_v0 }
 0x4f3   :  { %v572_v1 = vpop.xlane.xlu0 %571 }
 0x4f4   :  { %v573_v2 = vsub.f32 %v566_v42, %v572_v1 }
 0x4f6   :  { %v574_v3 = vmul.f32 1.442695, %v573_v2 }
 0x4f7   :  { %v746_v4 = vpop.xlane.xlu0 %745 }
 0x4f8   :  { %1859 = vpow2.f32 %v574_v3  ;;  %v747_v5 = vsub.f32 %v740_v45, %v746_v4 }
 0x4fa   :  { %v748_v6 = vmul.f32 1.442695, %v747_v5 }
 0x4fc   :  { %1861 = vpow2.f32 %v748_v6 }
 0x502   :  { %v2162_v7 = vpop.eup %1859 }
 0x503   :  { %v1090_v11 = vpop.xlane.xlu0 %1089  ;;  %v576_v12 = vsel %vm151_vm2, %v2162_v7, 0.0 }
 0x504   :  { %v1091_v13 = vsub.f32 %v1084_v52, %v1090_v11  ;;  %577 = vadd.xlane.f32.xlu0 %v576_v12 }
 0x506   :  { %v2166_v14 = vpop.eup %1861  ;;  %v1092_v15 = vmul.f32 1.442695, %v1091_v13  ;;  %v398_v16 = vpop.xlane.xlu1 %397 }
 0x507   :  { %v750_v17 = vsel %vm151_vm2, %v2166_v14, 0.0  ;;  %v399_v20 = vsub.f32 %v392_v55, %v398_v16 }
 0x508   :  { %1863 = vpow2.f32 %v1092_v15  ;;  %751 = vadd.xlane.f32.xlu1 %v750_v17 }
 0x509   :  { %v400_v26 = vmul.f32 1.442695, %v399_v20 }
 0x50a   :  { %v921_v18 = vpop.xlane.xlu1 %920 }
 0x50b   :  { %v922_v19 = vsub.f32 %v915_v48, %v921_v18 }
 0x50d   :  { %v923_v21 = vmul.f32 1.442695, %v922_v19 }
 0x50e   :  { %v1436_v22 = vpop.xlane.xlu0 %1435  ;;  %v1263_v23 = vpop.xlane.xlu1 %1262 }
 0x50f   :  { %1865 = vpow2.f32 %v923_v21  ;;  %v1437_v24 = vsub.f32 %v1430_v61, %v1436_v22  ;;  %v1264_v25 = vsub.f32 %v1257_v58, %v1263_v23 }
 0x511   :  { %v1438_v27 = vmul.f32 1.442695, %v1437_v24  ;;  %v1265_v28 = vmul.f32 1.442695, %v1264_v25 }
 0x512   :  { %v2170_v29 = vpop.eup %1863 }
 0x513   :  { %1867 = vpow2.f32 %v1438_v27  ;;  %v1094_v30 = vsel %vm151_vm2, %v2170_v29, 0.0 }
 0x514   :  { %1869 = vpow2.f32 %v1265_v28  ;;  %1095 = vadd.xlane.f32.xlu1 %v1094_v30 }
 0x515   :  { %1871 = vpow2.f32 %v400_v26 }
 0x519   :  { %v2174_v31 = vpop.eup %1865 }
 0x51a   :  { %v925_v32 = vsel %vm151_vm2, %v2174_v31, 0.0 }
 0x51b   :  { %926 = vadd.xlane.f32.xlu0 %v925_v32  ;;  %v1532_v32 = vld [vmem:[#allocation8 + $0x8] sm:$0xff] }
 0x51d   :  { %v2178_v33 = vpop.eup %1867 }
 0x51e   :  { %v2180_v34 = vpop.eup %1869  ;;  %v1440_v35 = vsel %vm151_vm2, %v2178_v33, 0.0 }
 0x51f   :  { %v1872_v36 = vpop.eup %1871  ;;  %1441 = vadd.xlane.f32.xlu1 %v1440_v35  ;;  %v1267_v37 = vsel %vm151_vm2, %v2180_v34, 0.0  ;;  %v1533_v35 = vld [vmem:[#allocation8 + $0x10] sm:$0xff] }
 0x520   :  { %1268 = vadd.xlane.f32.xlu0 %v1267_v37  ;;  %v402_v38 = vsel %vm151_vm2, %v1872_v36, 0.0 }
 0x523   :  { %403 = vadd.xlane.f32.xlu1 %v402_v38 }
 0x534   :  { %584 = vrot.lane.b32.xlu1 %v2089_v10, %s1996_s8 }
 0x536   :  { %410 = vrot.lane.b32.xlu0 %v2089_v10, %s1997_s9 }
 0x538   :  { %758 = vrot.lane.b32.xlu1 %v2089_v10, %s1998_s10 }
 0x53a   :  { %933 = vrot.lane.b32.xlu0 %v2087_v9, %s1988_s2 }
 0x53c   :  { %1102 = vrot.lane.b32.xlu1 %v2087_v9, %s1997_s9 }
 0x53e   :  { %1275 = vrot.lane.b32.xlu0 %v2087_v9, %s1996_s8 }
 0x540   :  { %1448 = vrot.lane.b32.xlu1 %v2087_v9, %s1998_s10 }
 0x591   :  { %v578_v39 = vpop.xlane.xlu0 %577 }
 0x592   :  { %1873 = vrcp.f32 %v578_v39 }
 0x595   :  { %v752_v40 = vpop.xlane.xlu1 %751 }
 0x596   :  { %1875 = vrcp.f32 %v752_v40 }
 0x59c   :  { %v1874_v10 = vpop.eup %1873 }
 0x59d   :  { %v580_v48 = vmul.f32 %v1874_v10, %v578_v39 }
 0x59f   :  { %v581_v50 = vsub.f32 2.0, %v580_v48 }
 0x5a0   :  { %v1876_v47 = vpop.eup %1875 }
 0x5a1   :  { %v1096_v41 = vpop.xlane.xlu1 %1095  ;;  %v754_v51 = vmul.f32 %v1876_v47, %v752_v40  ;;  %v582_v55 = vmul.f32 %v1874_v10, %v581_v50  ;;  %v1669_v50 = vld [vmem:[%s2254_s3] ss:$0 sm:$0xff] }
 0x5a3   :  { %v755_v56 = vsub.f32 2.0, %v754_v51  ;;  %v583_v61 = vmul.f32 %v2162_v7, %v582_v55 }
 0x5a5   :  { %v756_v62 = vmul.f32 %v1876_v47, %v755_v56 }
 0x5a7   :  { %v757_v3 = vmul.f32 %v2166_v14, %v756_v62 }
 0x5a8   :  { %v927_v42 = vpop.xlane.xlu0 %926 }
 0x5ac   :  { %v1442_v43 = vpop.xlane.xlu1 %1441 }
 0x5ad   :  { %v1269_v44 = vpop.xlane.xlu0 %1268 }
 0x5b0   :  { %v404_v45 = vpop.xlane.xlu1 %403 }
 0x5b1   :  { %v411_v46 = vpop.permute.xlu0 %410  ;;  %1877 = vrcp.f32 %v404_v45 }
 0x5b2   :  { %1743 = vmatpush3.msra.mxu1 %v411_v46  ;;  %1879 = vrcp.f32 %v927_v42 }
 0x5b3   :  { %1752 = vmatprep.subr.mxu1 %v1986_v8  ;;  %1881 = vrcp.f32 %v1096_v41 }
 0x5b4   :  { %1883 = vrcp.f32 %v1269_v44  ;;  %v585_v59 = vpop.permute.xlu1 %584 }
 0x5b5   :  { %1885 = vrcp.f32 %v1442_v43  ;;  %v934_v11 = vpop.permute.xlu0 %933 }
 0x5b8   :  { %v759_v2 = vpop.permute.xlu1 %758 }
 0x5b9   :  { %v1276_v20 = vpop.permute.xlu0 %1275 }
 0x5bb   :  { %v1878_v9 = vpop.eup %1877 }
 0x5bc   :  { %v406_v49 = vmul.f32 %v1878_v9, %v404_v45  ;;  %v1880_v53 = vpop.eup %1879  ;;  %v1103_v14 = vpop.permute.xlu1 %1102 }
 0x5bd   :  { %v929_v57 = vmul.f32 %v1880_v53, %v927_v42  ;;  %v1882_v60 = vpop.eup %1881 }
 0x5be   :  { %v407_v52 = vsub.f32 2.0, %v406_v49  ;;  %v1098_v63 = vmul.f32 %v1882_v60, %v1096_v41  ;;  %v1884_v1 = vpop.eup %1883 }
 0x5bf   :  { %v930_v0 = vsub.f32 2.0, %v929_v57  ;;  %v1271_v6 = vmul.f32 %v1884_v1, %v1269_v44  ;;  %v1886_v7 = vpop.eup %1885 }
 0x5c0   :  { %v408_v54 = vmul.f32 %v1878_v9, %v407_v52  ;;  %v1099_v4 = vsub.f32 2.0, %v1098_v63  ;;  %v1444_v16 = vmul.f32 %v1886_v7, %v1442_v43  ;;  %v1449_v23 = vpop.permute.xlu1 %1448 }
 0x5c1   :  { %v931_v5 = vmul.f32 %v1880_v53, %v930_v0  ;;  %v1272_v15 = vsub.f32 2.0, %v1271_v6 }
 0x5c2   :  { %v409_v58 = vmul.f32 %v1872_v36, %v408_v54  ;;  %v1100_v12 = vmul.f32 %v1882_v60, %v1099_v4  ;;  %v1445_v19 = vsub.f32 2.0, %v1444_v16 }
 0x5c3   :  { %v932_v13 = vmul.f32 %v2174_v31, %v931_v5  ;;  %v1273_v18 = vmul.f32 %v1884_v1, %v1272_v15  ;;  %v1531_v31 = vld [vmem:[#allocation8] sm:$0xff] }
 0x5c4   :  { %1745 = vmatmul.mubr.msk.f32.vlgmr.msra.gmra.mrb[6].mxu1 %vm151_vm2, %v409_v58  ;;  %v1101_v17 = vmul.f32 %v2170_v29, %v1100_v12  ;;  %v1446_v22 = vmul.f32 %v1886_v7, %v1445_v19 }
 0x5c5   :  { %1753 = vmatpush3.msra.mxu1 %v585_v59  ;;  %1754 = vmatprep.mubr.msk.f32.mxu1 %vm1987_vm1, %v1986_v8  ;;  %v1274_v21 = vmul.f32 %v2180_v34, %v1273_v18  ;;  %v1826_v34 = vpack.c.bf16 %v1532_v32, %v1531_v31 }
 0x5c6   :  { %1762 = vmatprep.subr.mxu1 %v1986_v8  ;;  %v1447_v24 = vmul.f32 %v2178_v33, %v1446_v22  ;;  %v1534_v33 = vld [vmem:[#allocation8 + $0x18] sm:$0xff] }
 0x5c7   :  { %1827 = vmatprep.subr.bf16.mxu0 %v1826_v34  ;;  %v1830_v37 = vpack.c.bf16 %v1534_v33, %v1533_v35 }
 0x5c8   :  { %1755 = vmatmul.mubr.msk.f32.vlgmr.msra.gmra.mrb[8].mxu1 %vm151_vm2, %v583_v61  ;;  %1829 = vmatpush3.bf16.msra.mxu0 %v1826_v34 }
 0x5c9   :  { %1763 = vmatpush3.msra.mxu1 %v759_v2  ;;  %1764 = vmatprep.mubr.msk.f32.mxu1 %vm1987_vm1, %v1986_v8 }
 0x5ca   :  { %1772 = vmatprep.subr.mxu1 %v1986_v8  ;;  %1831 = vmatprep.subr.bf16.mxu0 %v1830_v37 }
 0x5cc   :  { %1765 = vmatmul.mubr.msk.f32.vlgmr.msra.gmra.mrb[10].mxu1 %vm151_vm2, %v757_v3  ;;  %1833 = vmatpush3.bf16.msra.mxu0 %v1830_v37 }
 0x5cd   :  { %1773 = vmatpush3.msra.mxu1 %v934_v11  ;;  %1774 = vmatprep.mubr.msk.f32.mxu1 %vm1987_vm1, %v1986_v8 }
 0x5ce   :  { %1782 = vmatprep.subr.mxu1 %v1986_v8 }
 0x5d0   :  { %1775 = vmatmul.mubr.msk.f32.vlgmr.msra.gmra.mrb[12].mxu1 %vm151_vm2, %v932_v13 }
 0x5d1   :  { %1783 = vmatpush3.msra.mxu1 %v1103_v14  ;;  %1784 = vmatprep.mubr.msk.f32.mxu1 %vm1987_vm1, %v1986_v8 }
 0x5d2   :  { %1792 = vmatprep.subr.mxu1 %v1986_v8 }
 0x5d4   :  { %1785 = vmatmul.mubr.msk.f32.vlgmr.msra.gmra.mrb[14].mxu1 %vm151_vm2, %v1101_v17 }
 0x5d5   :  { %1793 = vmatpush3.msra.mxu1 %v1276_v20  ;;  %1794 = vmatprep.mubr.msk.f32.mxu1 %vm1987_vm1, %v1986_v8 }
 0x5d6   :  { %1802 = vmatprep.subr.mxu1 %v1986_v8 }
 0x5d8   :  { %1795 = vmatmul.mubr.msk.f32.vlgmr.msra.gmra.mrb[16].mxu1 %vm151_vm2, %v1274_v21 }
 0x5d9   :  { %1803 = vmatpush3.msra.mxu1 %v1449_v23  ;;  %1804 = vmatprep.mubr.msk.f32.mxu1 %vm1987_vm1, %v1986_v8 }
 0x5dc   :  { %1805 = vmatmul.mubr.msk.f32.vlgmr.msra.gmra.mrb[18].mxu1 %vm151_vm2, %v1447_v24 }
 0x697   :  { %v482_v25 = vpop.f32.mrb[6].mxu1 }
 0x698   :  { %487 = vrot.lane.b32.xlu0 %v482_v25, %s1984_s28  ;;  %v1746_v26 = vpop.f32.mrb[7].mxu1 }
 0x69b   :  { %v656_v27 = vpop.f32.mrb[8].mxu1 }
 0x69c   :  { %661 = vrot.lane.b32.xlu1 %v656_v27, %s1999_s11  ;;  %v1756_v28 = vpop.f32.mrb[9].mxu1 }
 0x69f   :  { %v830_v29 = vpop.f32.mrb[10].mxu1 }
 0x6a0   :  { %835 = vrot.lane.b32.xlu1 %v830_v29, %s2000_s12  ;;  %v1766_v30 = vpop.f32.mrb[11].mxu1 }
 0x6a3   :  { %v1005_v8 = vpop.f32.mrb[12].mxu1 }
 0x6a4   :  { %1009 = vst.msk [vmem:[#allocation2 + $0x8] sm:$0xff] %vm151_vm2, %v1005_v8  ;;  %v1776_v36 = vpop.f32.mrb[13].mxu1 }
 0x6a7   :  { %v1174_v38 = vpop.f32.mrb[14].mxu1 }
 0x6a8   :  { %1179 = vrot.lane.b32.xlu0 %v1174_v38, %s1984_s28  ;;  %v1786_v39 = vpop.f32.mrb[15].mxu1 }
 0x6ab   :  { %v1347_v40 = vpop.f32.mrb[16].mxu1 }
 0x6ac   :  { %1352 = vrot.lane.b32.xlu0 %v1347_v40, %s1999_s11  ;;  %v1796_v41 = vpop.f32.mrb[17].mxu1 }
 0x6af   :  { %v1520_v42 = vpop.f32.mrb[18].mxu1 }
 0x6b0   :  { %1525 = vrot.lane.b32.xlu1 %v1520_v42, %s2000_s12  ;;  %v1806_v43 = vpop.f32.mrb[19].mxu1 }
 0x70a   :  { %v488_v44 = vpop.permute.xlu0 %487 }
 0x70b   :  { %491 = vst.msk [vmem:[#allocation2] sm:$0xff] %vm490_vm3, %v488_v44 }
 0x70e   :  { %v662_v45 = vpop.permute.xlu1 %661 }
 0x70f   :  { %665 = vst.msk [vmem:[#allocation2] sm:$0xff] %vm664_vm4, %v662_v45 }
 0x712   :  { %v836_v46 = vpop.permute.xlu1 %835 }
 0x713   :  { %839 = vst.msk [vmem:[#allocation2] sm:$0xff] %vm838_vm5, %v836_v46 }
 0x71a   :  { %v1180_v10 = vpop.permute.xlu0 %1179  ;;  %v1529_v47 = vld [vmem:[#allocation2] sm:$0xff] }
 0x71b   :  { %1182 = vst.msk [vmem:[#allocation2 + $0x8] sm:$0xff] %vm490_vm3, %v1180_v10  ;;  %1815 = vmatprep.mubr.msk.f32.mxu0 %vm65_vm0, %v1529_v47 }
 0x71e   :  { %v1353_v48 = vpop.permute.xlu0 %1352 }
 0x71f   :  { %1355 = vst.msk [vmem:[#allocation2 + $0x8] sm:$0xff] %vm664_vm4, %v1353_v48 }
 0x722   :  { %v1526_v9 = vpop.permute.xlu1 %1525 }
 0x723   :  { %1528 = vst.msk [vmem:[#allocation2 + $0x8] sm:$0xff] %vm838_vm5, %v1526_v9 }
 0x72a   :  { %v1530_v49 = vld [vmem:[#allocation2 + $0x8] sm:$0xff] }
 0x72b   :  { %1816 = vmatmul.mubr.msk.f32.vlgmr.msra.gmra.mrb[14].mxu0 %vm65_vm0, %v1530_v49 }
 0x7fe   :  { %v1817_v51 = vpop.f32.mrb[14].mxu0 }
 0x7ff   :  { %v1620_v52 = vadd.f32 %v1817_v51, %v1669_v50  ;;  %v1614_v53 = vpop.f32.mrb[15].mxu0 }
 0x800   :  { %v1615_v54 = vadd.f32 %v1669_v50, %v1614_v53 }
 0x801   :  { %1624 = vst.msk [vmem:[#allocation9 + $0x8] sm:$0xff] %vm65_vm0, %v1620_v52 }
 0x802   :  { %1623 = vst.msk [vmem:[#allocation9] sm:$0xff] %vm65_vm0, %v1615_v54 }
 0x803   :  { %1964 = shalt.err (!%p1961_p0)
}
 0x804   :  { %s1965_s19 = scalar_lea.hbm %s2255_s4, 256 }
 0x805   :  { %p1966_p1 = scmp.ne.s32.totalorder %s2255_s4, %s1965_s19  ;;  %p1969_p2 = scmp.lt.u32.totalorder %s1965_s19, %s2255_s4 }
 0x807   :  { %p1971_p3 = pnand %p1969_p2, %p1966_p1 }
 0x809   :  { %1974 = shalt.err (!%p1971_p3)
}
 0x80a   :  { %1636 = dma.vmem_to_hbm [thread:$0]  %s1631_s15, 256, %s2255_s4, [#allocation5], %s1983_s27, %s1983_s27, %s1984_s28  }
 0x80b   :  { %1979 = dma.done.wait [#allocation5], 256  }
 0x80c   :  { %1980 = vsyncadd [#allocation5], 4294967040 }
 0x80d   :  { %1640 = vsyncpa [#allocation4], 1 }
 0x80e   :  { %1641 = vsyncpa [#allocation7], 1 }
 0x80f   :  { %1642 = vsyncpa [#allocation5], 1 }

</bundles_post_ra>
